<compile_context>
chip_gen: v6e
topology: v6e:2x2x1
jax: 0.10.0
libtpu: 0.0.40
codegen_flags: <defaults>
</compile_context>

<pallas_src>
import functools

import jax
import jax.numpy as jnp
from jax import lax
from jax.experimental import pallas as pl
from jax.experimental.pallas import tpu as pltpu

_LANE = 128
_SUBLANE = 8
_TILE = _LANE * _SUBLANE                 # 1024 elements per (8, 128) f32 vreg tile
_CHUNK_TILES = 128                       # in-kernel chunk: 512 KiB f32 of temporaries/stream
_MAX_TILES_PER_BLOCK = 1024              # 4 MiB f32 per input stream per buffer
_MAX_DW_BLOCK_BYTES = 2 * 1024 * 1024    # per-stream block budget for the dw path
_VMEM_LIMIT = 32 * 1024 * 1024           # safe scoped-VMEM budget on v5e/v6e/v7x


def _focal_terms(pred, gt):
    """Per-element focal terms. Assumes real heatmaps have gt <= 1."""
    pred = pred.astype(jnp.float32)
    gt = gt.astype(jnp.float32)

    is_pos = gt == 1.0
    omp = 1.0 - pred

    # Single transcendental per element; the select keeps the log argument in
    # the "live" branch, so the other branch never produces -inf * 0 = NaN.
    lg = jnp.log(jnp.where(is_pos, pred, omp))

    omg = 1.0 - gt
    neg_w = omg * omg
    neg_w = neg_w * neg_w                              # (1 - gt)^4
    pos_term = lg * (omp * omp)                        # log(pred)   * (1-pred)^2
    neg_term = lg * (pred * pred) * neg_w              # log(1-pred) * pred^2 * (1-gt)^4

    # gt <= 1 for real data => not-positive implies gt < 1 (the torch gt.lt(1)
    # mask); padded elements use pred=0, gt=0 so neg_term == 0 exactly.
    per = jnp.where(is_pos, pos_term, neg_term)
    pos_cnt = is_pos.astype(jnp.float32)
    return per, pos_cnt


def _focal_flat_kernel(pred_ref, gt_ref, loss_ref, pos_ref, *,
                       n_tiles, tiles_per_block, chunk_tiles, masked):
    """One grid block of `tiles_per_block` (8,128) tiles, reduced chunk-by-chunk.

    The chunk loop keeps the elementwise intermediates at ~chunk size so large
    (4 MiB/stream) input blocks do not blow up VMEM.
    """
    nchunks = tiles_per_block // chunk_tiles
    block_tile0 = pl.program_id(0) * tiles_per_block

    def chunk_body(c, carry):
        loss_acc, pos_acc = carry
        start = pl.multiple_of(c * chunk_tiles, chunk_tiles)
        pred = pred_ref[pl.ds(start, chunk_tiles)]
        gt = gt_ref[pl.ds(start, chunk_tiles)]
        per, pos_cnt = _focal_terms(pred, gt)
        if masked:
            # Zero out tiles past the end of the logical stream (the last grid
            # block may read unspecified values beyond n_tiles).
            tidx = (block_tile0 + start
                    + lax.broadcasted_iota(jnp.int32, per.shape, 0))
            valid = tidx < n_tiles
            per = jnp.where(valid, per, 0.0)
            pos_cnt = jnp.where(valid, pos_cnt, 0.0)
        return (loss_acc + jnp.sum(per, axis=0),
                pos_acc + jnp.sum(pos_cnt, axis=0))

    zero = jnp.zeros((_SUBLANE, _LANE), jnp.float32)
    loss, pos = lax.fori_loop(0, nchunks, chunk_body, (zero, zero))
    loss_ref[0] = loss
    pos_ref[0] = pos


def _focal_dw_kernel(pred_ref, gt_ref, dw_ref, loss_ref, pos_ref, *,
                     rows, rows_per_block, masked):
    """Distance-weighted variant on a (rows, H*W) layout; dw block is (1, H*W)."""
    per, pos_cnt = _focal_terms(pred_ref[...], gt_ref[...])
    per = per * dw_ref[...]                      # (1, HW) broadcasts over the rows
    if masked:
        ridx = (pl.program_id(0) * rows_per_block
                + lax.broadcasted_iota(jnp.int32, per.shape, 0))
        valid = ridx < rows
        per = jnp.where(valid, per, 0.0)
        pos_cnt = jnp.where(valid, pos_cnt, 0.0)
    loss_ref[0] = jnp.sum(per, keepdims=True)
    pos_ref[0] = jnp.sum(pos_cnt, keepdims=True)


def _finalize(loss_partials, pos_partials):
    total = jnp.sum(loss_partials)
    num_pos = jnp.sum(pos_partials)
    # pos part is identically 0 when num_pos == 0, so this equals the original
    # "if num_pos == 0: -neg else: -(pos+neg)/num_pos" branch.
    return -total / jnp.maximum(num_pos, jnp.float32(1.0))


def _focal_loss_flat(pred, gt, *, max_tiles_per_block, chunk_tiles):
    n = pred.size
    pred_flat = pred.reshape(-1)
    gt_flat = gt.reshape(-1)

    rem = n % _TILE
    if rem:
        # Ragged tail: pad less than one tile with pred=0, gt=0 (contributes
        # exactly 0 to both the loss sum and num_pos).
        # TODO(synk): this still costs one full-stream copy in XLA; a fully
        # zero-copy ragged path would need a separate tail kernel instance.
        pad = _TILE - rem
        pred_flat = jnp.pad(pred_flat, (0, pad))
        gt_flat = jnp.pad(gt_flat, (0, pad))
    n_tiles = pred_flat.shape[0] // _TILE

    # Zero-copy lane-dense views: (n_tiles, 8, 128).
    pred3 = pred_flat.reshape(n_tiles, _SUBLANE, _LANE)
    gt3 = gt_flat.reshape(n_tiles, _SUBLANE, _LANE)

    # Block tile count: as large as the budget allows and always a multiple of
    # the chunk size, so the in-kernel chunk loop never slices past the block.
    chunk = max(1, min(chunk_tiles, n_tiles))
    tpb = min(max_tiles_per_block, n_tiles)
    tpb = max(chunk, (tpb // chunk) * chunk)
    nb = pl.cdiv(n_tiles, tpb)
    masked = (n_tiles % tpb) != 0           # last grid block is partial

    kernel = functools.partial(
        _focal_flat_kernel, n_tiles=n_tiles, tiles_per_block=tpb,
        chunk_tiles=chunk, masked=masked)

    block = (tpb, _SUBLANE, _LANE)
    itemsize = jnp.dtype(pred.dtype).itemsize
    n_padded = n_tiles * _TILE
    cost = pl.CostEstimate(
        flops=14 * n_padded,
        transcendentals=n_padded,
        bytes_accessed=2 * n_padded * itemsize + 2 * nb * _TILE * 4)

    loss_p, pos_p = pl.pallas_call(
        kernel,
        out_shape=(jax.ShapeDtypeStruct((nb, _SUBLANE, _LANE), jnp.float32),
                   jax.ShapeDtypeStruct((nb, _SUBLANE, _LANE), jnp.float32)),
        grid_spec=pltpu.PrefetchScalarGridSpec(
            num_scalar_prefetch=0,
            grid=(nb,),
            in_specs=[pl.BlockSpec(block, lambda i: (i, 0, 0)),
                      pl.BlockSpec(block, lambda i: (i, 0, 0))],
            out_specs=[pl.BlockSpec((1, _SUBLANE, _LANE), lambda i: (i, 0, 0)),
                       pl.BlockSpec((1, _SUBLANE, _LANE), lambda i: (i, 0, 0))]),
        compiler_params=pltpu.CompilerParams(
            # Independent per-block partials: "parallel" lets v7x shard the
            # grid across both TensorCores; harmless on single-TC v5e/v6e.
            dimension_semantics=("parallel",),
            vmem_limit_bytes=_VMEM_LIMIT),
        cost_estimate=cost,
    )(pred3, gt3)

    return _finalize(loss_p, pos_p)


def _focal_loss_dw(pred, gt, *, max_dw_block_bytes):
    B, C, H, W = pred.shape
    rows = B * C
    ncol = H * W
    pred2 = pred.reshape(rows, ncol)        # zero-copy views
    gt2 = gt.reshape(rows, ncol)

    # torch: w, h = gt.shape[-2:]  -> w = H, h = W (names are swapped in the ref)
    xs = jnp.linspace(-1.0, 1.0, W, dtype=jnp.float32)
    ys = jnp.linspace(-1.0, 1.0, H, dtype=jnp.float32)
    x, y = jnp.meshgrid(xs, ys, indexing="xy")                  # (H, W)
    dw = (9.0 * jnp.sin(jnp.sqrt(x * x + y * y)) + 1.0).reshape(1, ncol)

    itemsize = jnp.dtype(pred.dtype).itemsize
    rows_budget = max(1, max_dw_block_bytes // max(1, ncol * itemsize))
    if rows <= rows_budget:
        rpb = rows                                   # full dim -> always legal
    else:
        rpb = max(_SUBLANE, (rows_budget // _SUBLANE) * _SUBLANE)
    nb = pl.cdiv(rows, rpb)
    masked = (rows % rpb) != 0

    kernel = functools.partial(_focal_dw_kernel, rows=rows, rows_per_block=rpb,
                               masked=masked)

    cost = pl.CostEstimate(
        flops=16 * rows * ncol,
        transcendentals=rows * ncol,
        bytes_accessed=2 * rows * ncol * itemsize + ncol * 4 + 2 * nb * 4)

    loss_p, pos_p = pl.pallas_call(
        kernel,
        out_shape=(jax.ShapeDtypeStruct((nb, 1, 1), jnp.float32),
                   jax.ShapeDtypeStruct((nb, 1, 1), jnp.float32)),
        grid_spec=pltpu.PrefetchScalarGridSpec(
            num_scalar_prefetch=0,
            grid=(nb,),
            in_specs=[pl.BlockSpec((rpb, ncol), lambda i: (i, 0)),
                      pl.BlockSpec((rpb, ncol), lambda i: (i, 0)),
                      # dw is only (1, H*W); constant block index => no
                      # per-(b,c) rebroadcast / extra HBM traffic.
                      pl.BlockSpec((1, ncol), lambda i: (0, 0))],
            out_specs=[pl.BlockSpec((1, 1, 1), lambda i: (i, 0, 0)),
                       pl.BlockSpec((1, 1, 1), lambda i: (i, 0, 0))]),
        compiler_params=pltpu.CompilerParams(
            dimension_semantics=("parallel",),
            vmem_limit_bytes=_VMEM_LIMIT),
        cost_estimate=cost,
    )(pred2, gt2, dw)

    return _finalize(loss_p, pos_p)


def focal_loss(pred, gt, use_distance_weight: bool = False, *,
               max_tiles_per_block: int = _MAX_TILES_PER_BLOCK,
               chunk_tiles: int = _CHUNK_TILES,
               max_dw_block_bytes: int = _MAX_DW_BLOCK_BYTES):
    """Matches FocalLoss.forward(pred, gt) from libs/TrackTacular/loss.py."""
    assert pred.shape == gt.shape and pred.ndim == 4
    if use_distance_weight:
        return _focal_loss_dw(pred, gt, max_dw_block_bytes=max_dw_block_bytes)
    return _focal_loss_flat(pred, gt, max_tiles_per_block=max_tiles_per_block,
                            chunk_tiles=chunk_tiles)


def _focal_loss_ref(pred, gt, use_distance_weight: bool = False):
    # Pure-JAX reference mirroring the PyTorch module, for verification.
    pred = pred.astype(jnp.float32)
    gt = gt.astype(jnp.float32)
    H, W = gt.shape[-2], gt.shape[-1]
    pos_inds = (gt == 1.0).astype(jnp.float32)
    neg_inds = (gt < 1.0).astype(jnp.float32)
    if use_distance_weight:
        xs = jnp.linspace(-1.0, 1.0, W, dtype=jnp.float32)
        ys = jnp.linspace(-1.0, 1.0, H, dtype=jnp.float32)
        x, y = jnp.meshgrid(xs, ys, indexing="xy")
        dw = 9.0 * jnp.sin(jnp.sqrt(x * x + y * y)) + 1.0
    else:
        dw = jnp.ones((H, W), dtype=jnp.float32)
    neg_weights = (1.0 - gt) ** 4
    pos_loss = jnp.log(pred) * (1.0 - pred) ** 2 * pos_inds * dw
    neg_loss = jnp.log(1.0 - pred) * pred ** 2 * neg_weights * neg_inds * dw
    num_pos = pos_inds.sum()
    p, n = pos_loss.sum(), neg_loss.sum()
    den = jnp.where(num_pos == 0, 1.0, num_pos)
    return jnp.where(num_pos == 0, -n, -(p + n) / den)


if __name__ == "__main__":
    root = jax.random.PRNGKey(0)

    def make_inputs(key, shape):
        k1, k2, k3 = jax.random.split(key, 3)
        pred = jax.nn.sigmoid(jax.random.normal(k1, shape, dtype=jnp.float32))
        gt_soft = jax.random.uniform(k2, shape, dtype=jnp.float32) * 0.9
        pos_mask = jax.random.uniform(k3, shape) < 0.05
        gt = jnp.where(pos_mask, jnp.float32(1.0), gt_soft)
        return pred, gt

    keys = jax.random.split(root, 8)
    results = []

    # 1) aligned fast path (zero-copy reshape, single block), no distance weight
    pred, gt = make_inputs(keys[0], (2, 4, 16, 16))
    results.append(("aligned", focal_loss(pred, gt), _focal_loss_ref(pred, gt)))

    # 2) distance-weight path: 2-D (B*C, H*W) layout with a (1, H*W) weight
    results.append(("distance_weight",
                    focal_loss(pred, gt, use_distance_weight=True),
                    _focal_loss_ref(pred, gt, use_distance_weight=True)))

    # 3) default chunked path (block > chunk): exercises the in-kernel loop
    pred3_, gt3_ = make_inputs(keys[1], (2, 4, 64, 512))      # 256 tiles
    results.append(("chunked", focal_loss(pred3_, gt3_),
                    _focal_loss_ref(pred3_, gt3_)))

    # 4) ragged grid: n_tiles not a multiple of the block (masked tail block)
    pred4_, gt4_ = make_inputs(keys[2], (2, 4, 16, 24))        # 3 tiles
    results.append(("ragged_grid",
                    focal_loss(pred4_, gt4_, max_tiles_per_block=2, chunk_tiles=1),
                    _focal_loss_ref(pred4_, gt4_)))

    # 5) ragged element count: flat stream needs a (< 1 tile) zero pad
    pred5_, gt5_ = make_inputs(keys[3], (1, 3, 19, 23))        # 1311 elements
    results.append(("ragged_n", focal_loss(pred5_, gt5_),
                    _focal_loss_ref(pred5_, gt5_)))

    # 6) distance-weight path with a partial (masked) row block
    pred6_, gt6_ = make_inputs(keys[4], (2, 5, 16, 16))        # 10 rows of 256
    results.append(("dw_ragged_rows",
                    focal_loss(pred6_, gt6_, use_distance_weight=True,
                               max_dw_block_bytes=8 * 256 * 4),
                    _focal_loss_ref(pred6_, gt6_, use_distance_weight=True)))

    for name, out, ref in results:
        out = jax.block_until_ready(out)
        ref = jax.block_until_ready(ref)
        assert bool(jnp.isfinite(out)), (name, out)
        assert jnp.allclose(out, ref, rtol=1e-4, atol=1e-5), (name, out, ref)

    print("KERNEL_OK")
</pallas_src>

<mosaic_0001>
module attributes {stable_mosaic.version = 11 : i64} {
  func.func @_focal_flat_kernel(%arg0: i32, %arg1: memref<2x8x128xf32, #tpu.memory_space<vmem>>, %arg2: memref<2x8x128xf32, #tpu.memory_space<vmem>>, %arg3: memref<1x8x128xf32, #tpu.memory_space<vmem>>, %arg4: memref<1x8x128xf32, #tpu.memory_space<vmem>>) attributes {dimension_semantics = [#tpu.dimension_semantics<parallel>], iteration_bounds = array<i64: 1>, scalar_prefetch = 0 : i64, scratch_operands = 0 : i64, tpu.core_type = #tpu.core_type<tc>, window_params = [{transform_indices = @transform_0, window_bounds = array<i64: 2, 8, 128>}, {transform_indices = @transform_1, window_bounds = array<i64: 2, 8, 128>}, {transform_indices = @transform_2, window_bounds = array<i64: 1, 8, 128>}, {transform_indices = @transform_3, window_bounds = array<i64: 1, 8, 128>}]} {
    %cst = arith.constant 0.000000e+00 : f32
    %0 = vector.broadcast %cst : f32 to vector<8x128xf32>
    %c0_i32 = arith.constant 0 : i32
    %c2_i32 = arith.constant 2 : i32
    %1 = arith.muli %c0_i32, %c2_i32 : i32
    %2 = tpu.assume_multiple %1, 2 : i32
    %3 = arith.index_cast %2 : i32 to index
    %c0 = arith.constant 0 : index
    %c0_0 = arith.constant 0 : index
    %4 = vector.load %arg1[%3, %c0, %c0_0] : memref<2x8x128xf32, #tpu.memory_space<vmem>>, vector<2x8x128xf32>
    %5 = arith.index_cast %2 : i32 to index
    %c0_1 = arith.constant 0 : index
    %c0_2 = arith.constant 0 : index
    %6 = vector.load %arg2[%5, %c0_1, %c0_2] : memref<2x8x128xf32, #tpu.memory_space<vmem>>, vector<2x8x128xf32>
    %cst_3 = arith.constant 1.000000e+00 : f32
    %7 = vector.broadcast %cst_3 : f32 to vector<2x8x128xf32>
    %8 = arith.cmpf oeq, %6, %7 : vector<2x8x128xf32>
    %cst_4 = arith.constant 1.000000e+00 : f32
    %9 = vector.broadcast %cst_4 : f32 to vector<2x8x128xf32>
    %10 = arith.subf %9, %4 : vector<2x8x128xf32>
    %11 = arith.select %8, %4, %10 : vector<2x8x128xi1>, vector<2x8x128xf32>
    %12 = math.log %11 : vector<2x8x128xf32>
    %cst_5 = arith.constant 1.000000e+00 : f32
    %13 = vector.broadcast %cst_5 : f32 to vector<2x8x128xf32>
    %14 = arith.subf %13, %6 : vector<2x8x128xf32>
    %15 = arith.mulf %14, %14 : vector<2x8x128xf32>
    %16 = arith.mulf %15, %15 : vector<2x8x128xf32>
    %17 = arith.mulf %10, %10 : vector<2x8x128xf32>
    %18 = arith.mulf %12, %17 : vector<2x8x128xf32>
    %19 = arith.mulf %4, %4 : vector<2x8x128xf32>
    %20 = arith.mulf %12, %19 : vector<2x8x128xf32>
    %21 = arith.mulf %20, %16 : vector<2x8x128xf32>
    %22 = arith.select %8, %18, %21 : vector<2x8x128xi1>, vector<2x8x128xf32>
    %23 = arith.extui %8 : vector<2x8x128xi1> to vector<2x8x128xi32>
    %24 = arith.sitofp %23 : vector<2x8x128xi32> to vector<2x8x128xf32>
    %cst_6 = arith.constant dense<0.000000e+00> : vector<8x128xf32>
    %25 = vector.multi_reduction <add>, %22, %cst_6 [0] : vector<2x8x128xf32> to vector<8x128xf32>
    %26 = arith.addf %0, %25 : vector<8x128xf32>
    %cst_7 = arith.constant dense<0.000000e+00> : vector<8x128xf32>
    %27 = vector.multi_reduction <add>, %24, %cst_7 [0] : vector<2x8x128xf32> to vector<8x128xf32>
    %28 = arith.addf %0, %27 : vector<8x128xf32>
    %c1_i32 = arith.constant 1 : i32
    %c0_8 = arith.constant 0 : index
    %c0_9 = arith.constant 0 : index
    %c0_10 = arith.constant 0 : index
    %29 = vector.load %arg3[%c0_8, %c0_9, %c0_10] : memref<1x8x128xf32, #tpu.memory_space<vmem>>, vector<1x8x128xf32>
    %30 = vector.shape_cast %29 : vector<1x8x128xf32> to vector<8x128xf32>
    %31 = vector.shape_cast %26 : vector<8x128xf32> to vector<1x8x128xf32>
    tpu.vector_store %arg3[%c0_8, %c0_9, %c0_10], %31 {strides = array<i32>} : memref<1x8x128xf32, #tpu.memory_space<vmem>>, vector<1x8x128xf32>,
    %c0_11 = arith.constant 0 : index
    %c0_12 = arith.constant 0 : index
    %c0_13 = arith.constant 0 : index
    %32 = vector.load %arg4[%c0_11, %c0_12, %c0_13] : memref<1x8x128xf32, #tpu.memory_space<vmem>>, vector<1x8x128xf32>
    %33 = vector.shape_cast %32 : vector<1x8x128xf32> to vector<8x128xf32>
    %34 = vector.shape_cast %28 : vector<8x128xf32> to vector<1x8x128xf32>
    tpu.vector_store %arg4[%c0_11, %c0_12, %c0_13], %34 {strides = array<i32>} : memref<1x8x128xf32, #tpu.memory_space<vmem>>, vector<1x8x128xf32>,
    return
  }
  func.func @transform_0(%arg0: i32) -> (i32, i32, i32) {
    %c0_i32 = arith.constant 0 : i32
    %c0_i32_0 = arith.constant 0 : i32
    %c0_i32_1 = arith.constant 0 : i32
    return %arg0, %c0_i32, %c0_i32_0 : i32, i32, i32
  }
  func.func @transform_1(%arg0: i32) -> (i32, i32, i32) {
    %c0_i32 = arith.constant 0 : i32
    %c0_i32_0 = arith.constant 0 : i32
    %c0_i32_1 = arith.constant 0 : i32
    return %arg0, %c0_i32, %c0_i32_0 : i32, i32, i32
  }
  func.func @transform_2(%arg0: i32) -> (i32, i32, i32) {
    %c0_i32 = arith.constant 0 : i32
    %c0_i32_0 = arith.constant 0 : i32
    %c0_i32_1 = arith.constant 0 : i32
    return %arg0, %c0_i32, %c0_i32_0 : i32, i32, i32
  }
  func.func @transform_3(%arg0: i32) -> (i32, i32, i32) {
    %c0_i32 = arith.constant 0 : i32
    %c0_i32_0 = arith.constant 0 : i32
    %c0_i32_1 = arith.constant 0 : i32
    return %arg0, %c0_i32, %c0_i32_0 : i32, i32, i32
  }
}

</mosaic_0001>

<bundles_post_ra>
// kernel: tpu_custom_call.1
= control target key start
LH: loop header
LB: loop body
LE: loop exit
PB: predicated region body
PF: predicated region fallthrough
CT: control target
= control target key end

     0   :  { %9 = vsyncpa [#allocation3], 0  ;;  %s264_s0 = inlined_call_operand.hbm [shape: f32[2,8,128], index: 0, kind: input, shape index: {}]   ;;  %s265_s1 = inlined_call_operand.hbm [shape: f32[2,8,128], index: 1, kind: input, shape index: {}]   ;;  %s266_s2 = inlined_call_operand.hbm [shape: f32[1,8,128], index: 2, kind: output, shape index: {0}]   ;;  %s267_s3 = inlined_call_operand.hbm [shape: f32[1,8,128], index: 3, kind: output, shape index: {1}]  }
   0x1   :  { %10 = vsyncpa [#allocation6], 0 }
   0x2   :  { %11 = vsyncpa [#allocation4], 0 }
   0x3   :  { %12 = vsyncpa [#allocation9], 0  ;;  %s219_s12 = smov [#allocation2]  }
   0x4   :  { %s18_s13 = sshll.u32 %s219_s12, 4  ;;  %s19_s13 = int_to_ptr.vmem [resolvable:$true] %s18_s13 }
   0x5   :  { %s139_s14 = scalar_lea.vmem %s19_s13, 256  ;;  %p144_p1 = scmp.lt.s32.totalorder %s19_s13, %s19_s13 }
   0x6   :  { %p140_p0 = scmp.ne.s32.totalorder %s19_s13, %s139_s14  ;;  %p145_p2 = scmp.lt.s32.totalorder %s139_s14, %s139_s14 }
   0x8   :  { %p146_p3 = por %p145_p2, %p144_p1 }
   0xa   :  { %p147_p4 = pnand %p146_p3, %p140_p0 }
   0xc   :  { %150 = shalt.err (!%p147_p4)
}
   0xd   :  { %s220_s15 = smov 128   ;;  %s221_s16 = smov 8  }
   0xe   :  { %24 = dma.hbm_to_vmem [thread:$0]  %s264_s0, 256, %s19_s13, [#allocation3], %s220_s15, %s220_s15, %s221_s16  }
   0xf   :  { %s222_s19 = smov [#allocation5]  }
  0x10   :  { %s30_s20 = sshll.u32 %s222_s19, 4  ;;  %s31_s20 = int_to_ptr.vmem [resolvable:$true] %s30_s20 }
  0x11   :  { %s159_s21 = scalar_lea.vmem %s31_s20, 256  ;;  %p164_p6 = scmp.lt.s32.totalorder %s31_s20, %s31_s20 }
  0x12   :  { %p160_p5 = scmp.ne.s32.totalorder %s31_s20, %s159_s21  ;;  %p165_p7 = scmp.lt.s32.totalorder %s159_s21, %s159_s21 }
  0x14   :  { %p166_p8 = por %p165_p7, %p164_p6 }
  0x16   :  { %p167_p9 = pnand %p166_p8, %p160_p5 }
  0x18   :  { %170 = shalt.err (!%p167_p9)
}
  0x19   :  { %36 = dma.hbm_to_vmem [thread:$0]  %s265_s1, 256, %s31_s20, [#allocation6], %s220_s15, %s220_s15, %s221_s16  }
  0x1a   :  { %211 = dma.done.wait [#allocation3], 256  }
  0x1b   :  { %212 = vsyncadd [#allocation3], 4294967040 }
  0x1c   :  { %213 = dma.done.wait [#allocation6], 256  }
  0x1d   :  { %214 = vsyncadd [#allocation6], 4294967040  ;;  %v45_v0 = vld [vmem:[#allocation2] sm:$0xff]  ;;  %v46_v1 = vld [vmem:[#allocation2 + $0x8] sm:$0xff]  ;;  %s223_s0 = smov [#allocation8]   ;;  %v224_v8 = vmov 0.0  }
  0x1e   :  { %v48_v2 = vld [vmem:[#allocation5] sm:$0xff]  ;;  %v49_v3 = vld [vmem:[#allocation5 + $0x8] sm:$0xff]  ;;  %v52_v4 = vsub.f32 1.0, %v45_v0  ;;  %v53_v5 = vsub.f32 1.0, %v46_v1  ;;  %s104_s24 = sshll.u32 %s223_s0, 4  ;;  %s105_s24 = int_to_ptr.vmem [resolvable:$true] %s104_s24 }
  0x1f   :  { %vm50_vm0 = vcmp.eq.f32.partialorder %v48_v2, 1.0  ;;  %vm51_vm1 = vcmp.eq.f32.partialorder %v49_v3, 1.0  ;;  %s171_s1 = scalar_lea.vmem %s105_s24, 128  ;;  %p176_p11 = scmp.lt.s32.totalorder %s105_s24, %s105_s24 }
  0x20   :  { %v54_v6 = vsel %vm50_vm0, %v45_v0, %v52_v4  ;;  %v55_v7 = vsel %vm51_vm1, %v46_v1, %v53_v5  ;;  %v118_v9 = vsel %vm50_vm0, 1.0, %v224_v8  ;;  %v119_v10 = vsel %vm51_vm1, 1.0, %v224_v8  ;;  %p172_p10 = scmp.ne.s32.totalorder %s105_s24, %s171_s1  ;;  %p177_p12 = scmp.lt.s32.totalorder %s171_s1, %s171_s1 }
  0x21   :  { %127 = vlog2.f32 %v54_v6  ;;  %v84_v11 = vadd.f32 %v119_v10, %v118_v9 }
  0x22   :  { %129 = vlog2.f32 %v55_v7  ;;  %p178_p13 = por %p177_p12, %p176_p11 }
  0x23   :  { %87 = vst [vmem:[#allocation8] sm:$0xff] %v84_v11 }
  0x24   :  { %p179_p0 = pnand %p178_p13, %p172_p10 }
  0x26   :  { %182 = shalt.err (!%p179_p0)
}
  0x27   :  { %107 = dma.vmem_to_hbm [thread:$0]  %s105_s24, 128, %s267_s3, [#allocation9]   ;;  %v60_v12 = vsub.f32 1.0, %v48_v2  ;;  %v61_v13 = vsub.f32 1.0, %v49_v3  ;;  %v66_v16 = vmul.f32 %v52_v4, %v52_v4  ;;  %v70_v17 = vmul.f32 %v45_v0, %v45_v0 }
  0x28   :  { %v67_v19 = vmul.f32 %v53_v5, %v53_v5  ;;  %v71_v20 = vmul.f32 %v46_v1, %v46_v1  ;;  %s225_s3 = smov [#allocation7]  }
  0x29   :  { %v62_v14 = vmul.f32 %v60_v12, %v60_v12  ;;  %v63_v15 = vmul.f32 %v61_v13, %v61_v13  ;;  %s94_s27 = sshll.u32 %s225_s3, 4  ;;  %s95_s27 = int_to_ptr.vmem [resolvable:$true] %s94_s27 }
  0x2a   :  { %s191_s28 = scalar_lea.vmem %s95_s27, 128  ;;  %p196_p2 = scmp.lt.s32.totalorder %s95_s27, %s95_s27 }
  0x2b   :  { %v64_v23 = vmul.f32 %v62_v14, %v62_v14  ;;  %v65_v25 = vmul.f32 %v63_v15, %v63_v15  ;;  %p192_p1 = scmp.ne.s32.totalorder %s95_s27, %s191_s28  ;;  %p197_p3 = scmp.lt.s32.totalorder %s191_s28, %s191_s28 }
  0x2d   :  { %p198_p4 = por %p197_p3, %p196_p2 }
  0x2e   :  { %v128_v18 = vpop.eup %127 }
  0x2f   :  { %v130_v21 = vpop.eup %129  ;;  %v57_v22 = vmul.f32 0.6931472, %v128_v18  ;;  %p199_p5 = pnand %p198_p4, %p192_p1 }
  0x30   :  { %v59_v24 = vmul.f32 0.6931472, %v130_v21 }
  0x31   :  { %v68_v26 = vmul.f32 %v66_v16, %v57_v22  ;;  %v72_v27 = vmul.f32 %v70_v17, %v57_v22 }
  0x32   :  { %v69_v28 = vmul.f32 %v67_v19, %v59_v24  ;;  %v73_v29 = vmul.f32 %v71_v20, %v59_v24 }
  0x33   :  { %v74_v30 = vmul.f32 %v72_v27, %v64_v23 }
  0x34   :  { %v75_v31 = vmul.f32 %v73_v29, %v65_v25 }
  0x35   :  { %v76_v32 = vsel %vm50_vm0, %v68_v26, %v74_v30 }
  0x36   :  { %v77_v33 = vsel %vm51_vm1, %v69_v28, %v75_v31 }
  0x37   :  { %v82_v34 = vadd.f32 %v77_v33, %v76_v32 }
  0x39   :  { %86 = vst [vmem:[#allocation7] sm:$0xff] %v82_v34 }
  0x3a   :  { %202 = shalt.err (!%p199_p5)
}
  0x3b   :  { %97 = dma.vmem_to_hbm [thread:$0]  %s95_s27, 128, %s266_s2, [#allocation4]  }
  0x3c   :  { %215 = dma.done.wait [#allocation4], 128  }
  0x3d   :  { %216 = vsyncadd [#allocation4], 4294967168 }
  0x3e   :  { %217 = dma.done.wait [#allocation9], 128  }
  0x3f   :  { %218 = vsyncadd [#allocation9], 4294967168 }
  0x40   :  { %114 = vsyncpa [#allocation3], 1 }
  0x41   :  { %115 = vsyncpa [#allocation6], 1 }
  0x42   :  { %116 = vsyncpa [#allocation4], 1 }
  0x43   :  { %117 = vsyncpa [#allocation9], 1 }

</bundles_post_ra>
